<compile_context>
chip_gen: v6e
topology: v6e:2x2x1
jax: 0.10.0
libtpu: 0.0.40
codegen_flags: <defaults>
</compile_context>

<pallas_src>
import jax
import jax.numpy as jnp
from jax.experimental import pallas as pl
from jax.experimental.pallas import tpu as pltpu

TEMP = 0.5      # self.temp in the torch module (1/TEMP == 2 exploited below)
EPS = 1e-7      # eps in _relaxed_bern


# ----------------------------------------------------------------------------
# Fused kernel:
#   w[n, :] = scale_n * (sum_i sample_i[n, :] * 2**i - bias_n - 2**bitwidth)
#   act     = x @ mean_n(w[n, :]).view(D1, D2)
# ----------------------------------------------------------------------------
def _fused_forward_kernel(x_ref, u_ref, v_ref, delta_ref, scale_ref, bias_ref,
                          noise_ref, o_ref):
    bitwidth, n, k_rank = u_ref.shape
    d = v_ref.shape[2]
    m, d1 = x_ref.shape
    d2 = o_ref.shape[1]

    scale_over_n = scale_ref[...] * (1.0 / n)                  # (N, 1)

    # Constant part of mean_n w[n, :] (independent of d):
    #   -(1/N) * sum_n scale[n] * (bias[n] + 2**bitwidth)
    const = -jnp.sum(scale_over_n * (bias_ref[...] + (2.0 ** bitwidth)),
                     keepdims=True)                            # (1, 1)

    # mean_n w[n, d] = sum_i 2^i * sum_n (scale[n]/N) * sample_i[n, d] + const
    w_mean = jnp.zeros((1, d), jnp.float32)
    for i in range(bitwidth):                                  # static, tiny
        # Theta = U_i @ V_i + Delta_i : rank-K update on the VPU.
        u_i = u_ref[i]                                         # (N, K)
        v_i = v_ref[i]                                         # (K, D)
        theta = jnp.broadcast_to(delta_ref[i], (n, d))
        for k in range(k_rank):                                # static, tiny
            theta = theta + u_i[:, k:k + 1] * v_i[k:k + 1, :]

        # _relaxed_bern with temp = 0.5:
        #   drop_logit ~= theta + log((u+eps)/(1-u+eps))   (logit(sigmoid)=id)
        #   sample = 1 - sigmoid(drop_logit / temp) = sigmoid(-2*drop_logit)
        #          = 1 / (1 + exp(2*theta) * r*r),   r = (u+eps)/(1-u+eps)
        u_noise = noise_ref[i]                                 # (N, D)
        r = (u_noise + EPS) / (1.0 - u_noise + EPS)
        sample = 1.0 / (1.0 + jnp.exp(2.0 * theta) * (r * r))

        w_mean = w_mean + (2.0 ** i) * jnp.sum(
            scale_over_n * sample, axis=0, keepdims=True)      # (1, D)

    w_mean = w_mean + const                                    # (1, D1*D2)

    # act = x @ w_mean.view(D1, D2) as D1 outer-product accumulations (VPU);
    # avoids an in-kernel reshape and an almost-empty MXU pass at these sizes.
    x = x_ref[...]                                             # (M, D1)
    acc = jnp.zeros((m, d2), jnp.float32)
    for j in range(d1):                                        # static, tiny
        acc = acc + x[:, j:j + 1] * w_mean[:, j * d2:(j + 1) * d2]
    o_ref[...] = acc


def dense_binary_pca_forward(params, x, noise_key, *, D1, D2):
    bitwidth, n, _ = params["U"].shape
    d = params["V"].shape[2]
    m, d1 = x.shape
    assert d1 == D1 and d == D1 * D2

    # Uniform noise (matches torch.rand_like in _relaxed_bern).
    noise = jax.random.uniform(noise_key, (bitwidth, n, d), jnp.float32)

    vmem = pl.BlockSpec(memory_space=pltpu.MemorySpace.VMEM)
    return pl.pallas_call(
        _fused_forward_kernel,
        out_shape=jax.ShapeDtypeStruct((m, D2), jnp.float32),
        in_specs=[vmem] * 7,
        out_specs=vmem,
        # TODO(synk): at realistic N*D, add a grid (D-blocks "parallel",
        # N-blocks "arbitrary") with a (1, D_tile) scratch accumulator, raise
        # vmem_limit_bytes per generation (v7x 64 MiB / v5e 16 MiB scoped
        # default), pad D2 to a 128-multiple for lane-dense stores, and use
        # bf16 MXU operands if the final contraction grows large.
    )(x, params["U"], params["V"], params["Delta"],
      params["scale"], params["bias"], noise)


# ----------------------------------------------------------------------------
# Parameter init (deterministic, mirrors torch.normal(0, 1, shape))
# ----------------------------------------------------------------------------
def init_params(key, N, D1, D2, K, bitwidth):
    D = D1 * D2
    keys = jax.random.split(key, 2 + 3 * bitwidth)
    u = [jax.random.normal(keys[2 + 3 * i], (N, K), jnp.float32)
         for i in range(bitwidth)]
    v = [jax.random.normal(keys[3 + 3 * i], (K, D), jnp.float32)
         for i in range(bitwidth)]
    delta = [jax.random.normal(keys[4 + 3 * i], (1, D), jnp.float32)
             for i in range(bitwidth)]
    return {
        "scale": jax.random.normal(keys[0], (N, 1), jnp.float32),
        "bias": jax.random.normal(keys[1], (N, 1), jnp.float32),
        "U": jnp.stack(u),          # (bitwidth, N, K)
        "V": jnp.stack(v),          # (bitwidth, K, D)
        "Delta": jnp.stack(delta),  # (bitwidth, 1, D)
    }


if __name__ == "__main__":
    # Module defaults: N=5, D1=3, D2=2, K=2, bitwidth=2; x is (M, D1).
    N, D1, D2, K, bitwidth = 5, 3, 2, 2, 2
    M = 8

    root = jax.random.PRNGKey(0)
    pkey, xkey, nkey = jax.random.split(root, 3)

    params = init_params(pkey, N, D1, D2, K, bitwidth)
    x = jax.random.normal(xkey, (M, D1), jnp.float32)

    act = dense_binary_pca_forward(params, x, nkey, D1=D1, D2=D2)
    act = jax.block_until_ready(act)

    assert act.shape == (M, D2), act.shape
    # Mirrors the module's NaN guard (host-side; no print/exit in kernel).
    assert not bool(jnp.isnan(act).any()), "act nan"
    print("KERNEL_OK")
</pallas_src>

<mosaic_0001>
module attributes {stable_mosaic.version = 11 : i64} {
  func.func @_fused_forward_kernel(%arg0: memref<8x3xf32, #tpu.memory_space<vmem>>, %arg1: memref<2x5x2xf32, #tpu.memory_space<vmem>>, %arg2: memref<2x2x6xf32, #tpu.memory_space<vmem>>, %arg3: memref<2x1x6xf32, #tpu.memory_space<vmem>>, %arg4: memref<5x1xf32, #tpu.memory_space<vmem>>, %arg5: memref<5x1xf32, #tpu.memory_space<vmem>>, %arg6: memref<2x5x6xf32, #tpu.memory_space<vmem>>, %arg7: memref<8x2xf32, #tpu.memory_space<vmem>>) attributes {dimension_semantics = [], scalar_prefetch = 0 : i64, scratch_operands = 0 : i64, tpu.core_type = #tpu.core_type<tc>} {
    %c0 = arith.constant 0 : index
    %c0_0 = arith.constant 0 : index
    %0 = vector.load %arg4[%c0, %c0_0] : memref<5x1xf32, #tpu.memory_space<vmem>>, vector<5x1xf32>
    %cst = arith.constant 2.000000e-01 : f32
    %1 = vector.broadcast %cst : f32 to vector<5x1xf32>
    %2 = arith.mulf %0, %1 : vector<5x1xf32>
    %c0_1 = arith.constant 0 : index
    %c0_2 = arith.constant 0 : index
    %3 = vector.load %arg5[%c0_1, %c0_2] : memref<5x1xf32, #tpu.memory_space<vmem>>, vector<5x1xf32>
    %cst_3 = arith.constant 4.000000e+00 : f32
    %4 = vector.broadcast %cst_3 : f32 to vector<5x1xf32>
    %5 = arith.addf %3, %4 : vector<5x1xf32>
    %6 = arith.mulf %2, %5 : vector<5x1xf32>
    %7 = vector.shape_cast %6 : vector<5x1xf32> to vector<1x5x1xf32>
    %cst_4 = arith.constant dense<0.000000e+00> : vector<1xf32>
    %8 = vector.multi_reduction <add>, %7, %cst_4 [1, 2] : vector<1x5x1xf32> to vector<1xf32>
    %9 = vector.shape_cast %8 : vector<1xf32> to vector<1x1x1xf32>
    %10 = vector.extract %9[0, 0, 0] : f32 from vector<1x1x1xf32>
    %11 = vector.broadcast %10 : f32 to vector<1x1xf32>
    %cst_5 = arith.constant 0.000000e+00 : f32
    %12 = vector.broadcast %cst_5 : f32 to vector<1x1xf32>
    %13 = arith.subf %12, %11 : vector<1x1xf32>
    %cst_6 = arith.constant 0.000000e+00 : f32
    %14 = vector.broadcast %cst_6 : f32 to vector<1x6xf32>
    %c0_7 = arith.constant 0 : index
    %c0_8 = arith.constant 0 : index
    %c0_9 = arith.constant 0 : index
    %15 = vector.load %arg1[%c0_7, %c0_8, %c0_9] : memref<2x5x2xf32, #tpu.memory_space<vmem>>, vector<1x5x2xf32>
    %16 = vector.shape_cast %15 : vector<1x5x2xf32> to vector<5x2xf32>
    %c0_10 = arith.constant 0 : index
    %c0_11 = arith.constant 0 : index
    %c0_12 = arith.constant 0 : index
    %17 = vector.load %arg2[%c0_10, %c0_11, %c0_12] : memref<2x2x6xf32, #tpu.memory_space<vmem>>, vector<1x2x6xf32>
    %18 = vector.shape_cast %17 : vector<1x2x6xf32> to vector<2x6xf32>
    %c0_13 = arith.constant 0 : index
    %c0_14 = arith.constant 0 : index
    %c0_15 = arith.constant 0 : index
    %19 = vector.load %arg3[%c0_13, %c0_14, %c0_15] : memref<2x1x6xf32, #tpu.memory_space<vmem>>, vector<1x1x6xf32>
    %20 = vector.shape_cast %19 : vector<1x1x6xf32> to vector<1x6xf32>
    %21 = vector.shape_cast %20 : vector<1x6xf32> to vector<1x6xf32>
    %22 = vector.broadcast %21 : vector<1x6xf32> to vector<5x6xf32>
    %23 = vector.extract_strided_slice %16 {offsets = [0, 0], sizes = [5, 1], strides = [1, 1]} : vector<5x2xf32> to vector<5x1xf32>
    %24 = vector.extract_strided_slice %18 {offsets = [0, 0], sizes = [1, 6], strides = [1, 1]} : vector<2x6xf32> to vector<1x6xf32>
    %25 = vector.broadcast %23 : vector<5x1xf32> to vector<5x6xf32>
    %26 = vector.broadcast %24 : vector<1x6xf32> to vector<5x6xf32>
    %27 = arith.mulf %25, %26 : vector<5x6xf32>
    %28 = arith.addf %22, %27 : vector<5x6xf32>
    %29 = vector.extract_strided_slice %16 {offsets = [0, 1], sizes = [5, 1], strides = [1, 1]} : vector<5x2xf32> to vector<5x1xf32>
    %30 = vector.extract_strided_slice %18 {offsets = [1, 0], sizes = [1, 6], strides = [1, 1]} : vector<2x6xf32> to vector<1x6xf32>
    %31 = vector.broadcast %29 : vector<5x1xf32> to vector<5x6xf32>
    %32 = vector.broadcast %30 : vector<1x6xf32> to vector<5x6xf32>
    %33 = arith.mulf %31, %32 : vector<5x6xf32>
    %34 = arith.addf %28, %33 : vector<5x6xf32>
    %c0_16 = arith.constant 0 : index
    %c0_17 = arith.constant 0 : index
    %c0_18 = arith.constant 0 : index
    %35 = vector.load %arg6[%c0_16, %c0_17, %c0_18] : memref<2x5x6xf32, #tpu.memory_space<vmem>>, vector<1x5x6xf32>
    %36 = vector.shape_cast %35 : vector<1x5x6xf32> to vector<5x6xf32>
    %cst_19 = arith.constant 1.000000e-07 : f32
    %37 = vector.broadcast %cst_19 : f32 to vector<5x6xf32>
    %38 = arith.addf %36, %37 : vector<5x6xf32>
    %cst_20 = arith.constant 1.000000e+00 : f32
    %39 = vector.broadcast %cst_20 : f32 to vector<5x6xf32>
    %40 = arith.subf %39, %36 : vector<5x6xf32>
    %cst_21 = arith.constant 1.000000e-07 : f32
    %41 = vector.broadcast %cst_21 : f32 to vector<5x6xf32>
    %42 = arith.addf %40, %41 : vector<5x6xf32>
    %43 = arith.divf %38, %42 : vector<5x6xf32>
    %cst_22 = arith.constant 2.000000e+00 : f32
    %44 = vector.broadcast %cst_22 : f32 to vector<5x6xf32>
    %45 = arith.mulf %44, %34 : vector<5x6xf32>
    %46 = math.exp %45 : vector<5x6xf32>
    %47 = arith.mulf %43, %43 : vector<5x6xf32>
    %48 = arith.mulf %46, %47 : vector<5x6xf32>
    %cst_23 = arith.constant 1.000000e+00 : f32
    %49 = vector.broadcast %cst_23 : f32 to vector<5x6xf32>
    %50 = arith.addf %49, %48 : vector<5x6xf32>
    %cst_24 = arith.constant 1.000000e+00 : f32
    %51 = vector.broadcast %cst_24 : f32 to vector<5x6xf32>
    %52 = arith.divf %51, %50 : vector<5x6xf32>
    %53 = vector.broadcast %2 : vector<5x1xf32> to vector<5x6xf32>
    %54 = arith.mulf %53, %52 : vector<5x6xf32>
    %cst_25 = arith.constant dense<0.000000e+00> : vector<6xf32>
    %55 = vector.multi_reduction <add>, %54, %cst_25 [0] : vector<5x6xf32> to vector<6xf32>
    %56 = vector.shape_cast %55 : vector<6xf32> to vector<1x6xf32>
    %cst_26 = arith.constant 1.000000e+00 : f32
    %57 = vector.broadcast %cst_26 : f32 to vector<1x6xf32>
    %58 = arith.mulf %57, %56 : vector<1x6xf32>
    %59 = arith.addf %14, %58 : vector<1x6xf32>
    %c1 = arith.constant 1 : index
    %c0_27 = arith.constant 0 : index
    %c0_28 = arith.constant 0 : index
    %60 = vector.load %arg1[%c1, %c0_27, %c0_28] : memref<2x5x2xf32, #tpu.memory_space<vmem>>, vector<1x5x2xf32>
    %61 = vector.shape_cast %60 : vector<1x5x2xf32> to vector<5x2xf32>
    %c1_29 = arith.constant 1 : index
    %c0_30 = arith.constant 0 : index
    %c0_31 = arith.constant 0 : index
    %62 = vector.load %arg2[%c1_29, %c0_30, %c0_31] : memref<2x2x6xf32, #tpu.memory_space<vmem>>, vector<1x2x6xf32>
    %63 = vector.shape_cast %62 : vector<1x2x6xf32> to vector<2x6xf32>
    %c1_32 = arith.constant 1 : index
    %c0_33 = arith.constant 0 : index
    %c0_34 = arith.constant 0 : index
    %64 = vector.load %arg3[%c1_32, %c0_33, %c0_34] : memref<2x1x6xf32, #tpu.memory_space<vmem>>, vector<1x1x6xf32>
    %65 = vector.shape_cast %64 : vector<1x1x6xf32> to vector<1x6xf32>
    %66 = vector.shape_cast %65 : vector<1x6xf32> to vector<1x6xf32>
    %67 = vector.broadcast %66 : vector<1x6xf32> to vector<5x6xf32>
    %68 = vector.extract_strided_slice %61 {offsets = [0, 0], sizes = [5, 1], strides = [1, 1]} : vector<5x2xf32> to vector<5x1xf32>
    %69 = vector.extract_strided_slice %63 {offsets = [0, 0], sizes = [1, 6], strides = [1, 1]} : vector<2x6xf32> to vector<1x6xf32>
    %70 = vector.broadcast %68 : vector<5x1xf32> to vector<5x6xf32>
    %71 = vector.broadcast %69 : vector<1x6xf32> to vector<5x6xf32>
    %72 = arith.mulf %70, %71 : vector<5x6xf32>
    %73 = arith.addf %67, %72 : vector<5x6xf32>
    %74 = vector.extract_strided_slice %61 {offsets = [0, 1], sizes = [5, 1], strides = [1, 1]} : vector<5x2xf32> to vector<5x1xf32>
    %75 = vector.extract_strided_slice %63 {offsets = [1, 0], sizes = [1, 6], strides = [1, 1]} : vector<2x6xf32> to vector<1x6xf32>
    %76 = vector.broadcast %74 : vector<5x1xf32> to vector<5x6xf32>
    %77 = vector.broadcast %75 : vector<1x6xf32> to vector<5x6xf32>
    %78 = arith.mulf %76, %77 : vector<5x6xf32>
    %79 = arith.addf %73, %78 : vector<5x6xf32>
    %c1_35 = arith.constant 1 : index
    %c0_36 = arith.constant 0 : index
    %c0_37 = arith.constant 0 : index
    %80 = vector.load %arg6[%c1_35, %c0_36, %c0_37] : memref<2x5x6xf32, #tpu.memory_space<vmem>>, vector<1x5x6xf32>
    %81 = vector.shape_cast %80 : vector<1x5x6xf32> to vector<5x6xf32>
    %cst_38 = arith.constant 1.000000e-07 : f32
    %82 = vector.broadcast %cst_38 : f32 to vector<5x6xf32>
    %83 = arith.addf %81, %82 : vector<5x6xf32>
    %cst_39 = arith.constant 1.000000e+00 : f32
    %84 = vector.broadcast %cst_39 : f32 to vector<5x6xf32>
    %85 = arith.subf %84, %81 : vector<5x6xf32>
    %cst_40 = arith.constant 1.000000e-07 : f32
    %86 = vector.broadcast %cst_40 : f32 to vector<5x6xf32>
    %87 = arith.addf %85, %86 : vector<5x6xf32>
    %88 = arith.divf %83, %87 : vector<5x6xf32>
    %cst_41 = arith.constant 2.000000e+00 : f32
    %89 = vector.broadcast %cst_41 : f32 to vector<5x6xf32>
    %90 = arith.mulf %89, %79 : vector<5x6xf32>
    %91 = math.exp %90 : vector<5x6xf32>
    %92 = arith.mulf %88, %88 : vector<5x6xf32>
    %93 = arith.mulf %91, %92 : vector<5x6xf32>
    %cst_42 = arith.constant 1.000000e+00 : f32
    %94 = vector.broadcast %cst_42 : f32 to vector<5x6xf32>
    %95 = arith.addf %94, %93 : vector<5x6xf32>
    %cst_43 = arith.constant 1.000000e+00 : f32
    %96 = vector.broadcast %cst_43 : f32 to vector<5x6xf32>
    %97 = arith.divf %96, %95 : vector<5x6xf32>
    %98 = vector.broadcast %2 : vector<5x1xf32> to vector<5x6xf32>
    %99 = arith.mulf %98, %97 : vector<5x6xf32>
    %cst_44 = arith.constant dense<0.000000e+00> : vector<6xf32>
    %100 = vector.multi_reduction <add>, %99, %cst_44 [0] : vector<5x6xf32> to vector<6xf32>
    %101 = vector.shape_cast %100 : vector<6xf32> to vector<1x6xf32>
    %cst_45 = arith.constant 2.000000e+00 : f32
    %102 = vector.broadcast %cst_45 : f32 to vector<1x6xf32>
    %103 = arith.mulf %102, %101 : vector<1x6xf32>
    %104 = arith.addf %59, %103 : vector<1x6xf32>
    %105 = vector.broadcast %13 : vector<1x1xf32> to vector<1x6xf32>
    %106 = arith.addf %104, %105 : vector<1x6xf32>
    %c0_46 = arith.constant 0 : index
    %c0_47 = arith.constant 0 : index
    %107 = vector.load %arg0[%c0_46, %c0_47] : memref<8x3xf32, #tpu.memory_space<vmem>>, vector<8x3xf32>
    %cst_48 = arith.constant 0.000000e+00 : f32
    %108 = vector.broadcast %cst_48 : f32 to vector<8x2xf32>
    %109 = vector.extract_strided_slice %107 {offsets = [0, 0], sizes = [8, 1], strides = [1, 1]} : vector<8x3xf32> to vector<8x1xf32>
    %110 = vector.extract_strided_slice %106 {offsets = [0, 0], sizes = [1, 2], strides = [1, 1]} : vector<1x6xf32> to vector<1x2xf32>
    %111 = vector.broadcast %109 : vector<8x1xf32> to vector<8x2xf32>
    %112 = vector.broadcast %110 : vector<1x2xf32> to vector<8x2xf32>
    %113 = arith.mulf %111, %112 : vector<8x2xf32>
    %114 = arith.addf %108, %113 : vector<8x2xf32>
    %115 = vector.extract_strided_slice %107 {offsets = [0, 1], sizes = [8, 1], strides = [1, 1]} : vector<8x3xf32> to vector<8x1xf32>
    %116 = vector.extract_strided_slice %106 {offsets = [0, 2], sizes = [1, 2], strides = [1, 1]} : vector<1x6xf32> to vector<1x2xf32>
    %117 = vector.broadcast %115 : vector<8x1xf32> to vector<8x2xf32>
    %118 = vector.broadcast %116 : vector<1x2xf32> to vector<8x2xf32>
    %119 = arith.mulf %117, %118 : vector<8x2xf32>
    %120 = arith.addf %114, %119 : vector<8x2xf32>
    %121 = vector.extract_strided_slice %107 {offsets = [0, 2], sizes = [8, 1], strides = [1, 1]} : vector<8x3xf32> to vector<8x1xf32>
    %122 = vector.extract_strided_slice %106 {offsets = [0, 4], sizes = [1, 2], strides = [1, 1]} : vector<1x6xf32> to vector<1x2xf32>
    %123 = vector.broadcast %121 : vector<8x1xf32> to vector<8x2xf32>
    %124 = vector.broadcast %122 : vector<1x2xf32> to vector<8x2xf32>
    %125 = arith.mulf %123, %124 : vector<8x2xf32>
    %126 = arith.addf %120, %125 : vector<8x2xf32>
    %c0_49 = arith.constant 0 : index
    %c0_50 = arith.constant 0 : index
    %127 = vector.load %arg7[%c0_49, %c0_50] : memref<8x2xf32, #tpu.memory_space<vmem>>, vector<8x2xf32>
    tpu.vector_store %arg7[%c0_49, %c0_50], %126 {strides = array<i32>} : memref<8x2xf32, #tpu.memory_space<vmem>>, vector<8x2xf32>,
    return
  }
}

</mosaic_0001>

<bundles_post_ra>
// kernel: tpu_custom_call.1
= control target key start
LH: loop header
LB: loop body
LE: loop exit
PB: predicated region body
PF: predicated region fallthrough
CT: control target
= control target key end

     0   :  { %v229_v2 = vmov 0   ;;  %vm31_vm0 = vcmask 4096   ;;  %v230_v9 = vmov 1   ;;  %v231_v11 = vmov 2   ;;  %s310_s4 = inlined_call_operand.vmem [shape: f32[5,1], index: 4, kind: input, shape index: {}]   ;;  %s311_s5 = inlined_call_operand.vmem [shape: f32[5,1], index: 5, kind: input, shape index: {}]   ;;  %s312_s1 = inlined_call_operand.vmem [shape: f32[2,5,2], index: 1, kind: input, shape index: {}]   ;;  %s313_s0 = inlined_call_operand.vmem [shape: f32[8,3], index: 0, kind: input, shape index: {}]   ;;  %s314_s2 = inlined_call_operand.vmem [shape: f32[2,2,6], index: 2, kind: input, shape index: {}]   ;;  %s315_s6 = inlined_call_operand.vmem [shape: f32[2,5,6], index: 6, kind: input, shape index: {}]   ;;  %s316_s3 = inlined_call_operand.vmem [shape: f32[2,1,6], index: 3, kind: input, shape index: {}]   ;;  %s317_s7 = inlined_call_operand.vmem [shape: f32[8,2], index: 7, kind: output, shape index: {}]  }
   0x1   :  { %v26_v0 = vld [vmem:[%s310_s4] sm:$0x1f]  ;;  %210 = vset.pattern.permute.xlu1 %v229_v2  ;;  %209 = vset.pattern.permute.xlu0 %v229_v2  ;;  %v197_v7 = vld [vmem:[%s312_s1 + $0x8] sm:$0x1f]  ;;  %v58_v12 = vlaneseq  ;;  %vm94_vm1 = vcmask 45056   ;;  %vm190_vm2 = vcmask 15360  }
   0x2   :  { %v28_v1 = vld [vmem:[%s311_s5] sm:$0x1f]  ;;  %v27_v4 = vmul.f32 0.2, %v26_v0  ;;  %v201_v32 = vld [vmem:[%s315_s6 + $0x8] sm:$0x1f] }
   0x3   :  { %v44_v3 = vld [vmem:[%s312_s1] sm:$0x1f]  ;;  %v29_v5 = vadd.f32 4.0, %v28_v1  ;;  %v59_v13 = vshrl.u32 %v58_v12, 7  ;;  %v139_v35 = vsub.f32 1.0, %v201_v32 }
   0x4   :  { %55 = vperm.xlu1 %210, %v44_v3   ;;  %v162_v10 = vld [vmem:[%s313_s0] sm:$0xff]  ;;  %v138_v60 = vadd.f32 1e-07, %v201_v32 }
   0x5   :  { %v30_v6 = vmul.f32 %v29_v5, %v27_v4  ;;  %v60_v14 = vsub.s32 0, %v59_v13  ;;  %v45_v15 = vld [vmem:[%s314_s2] sm:$0x3]  ;;  %v70_v19 = vsub.s32 1, %v59_v13  ;;  %v198_v36 = vld [vmem:[%s314_s2 + $0x2] sm:$0x3] }
   0x6   :  { %v74_v16 = vld [vmem:[%s315_s6] sm:$0x1f]  ;;  %v140_v42 = vadd.f32 1e-07, %v139_v35  ;;  %s233_s6 = smov 124  }
   0x7   :  { %v32_v8 = vsel %vm31_vm0, %v30_v6, 0.0  ;;  %v61_v17 = vrot.slane %v45_v15, %v60_v14  ;;  %v76_v20 = vsub.f32 1.0, %v74_v16  ;;  %v196_v22 = vld [vmem:[%s316_s3] ss:$0 sm:$0xff]  ;;  %v71_v24 = vrot.slane %v45_v15, %v70_v19  ;;  %v200_v46 = vld [vmem:[%s316_s3 + $0x1] ss:$0 sm:$0xff] }
   0x8   :  { %211 = vset.pattern.permute.xlu1 %v230_v9  ;;  %33 = vadd.xlane.f32.xlu0 %v32_v8  ;;  %v75_v38 = vadd.f32 1e-07, %v74_v16  ;;  %v123_v41 = vrot.slane %v198_v36, %v60_v14  ;;  %v133_v43 = vrot.slane %v198_v36, %v70_v19  ;;  %s232_s3 = smov 126  }
   0x9   :  { %127 = vperm.xlu1 %211, %v197_v7   ;;  %v77_v25 = vadd.f32 1e-07, %v76_v20 }
   0xb   :  { %217 = vrcp.f32 %v77_v25 }
   0xd   :  { %65 = vperm.xlu1 %211, %v44_v3  }
  0x11   :  { %212 = vset.pattern.permute.xlu1 %v229_v2 }
  0x12   :  { %90 = vperm.xlu1 %212, %v27_v4  }
  0x16   :  { %213 = vset.pattern.permute.xlu1 %v230_v9 }
  0x17   :  { %171 = vperm.xlu1 %213, %v162_v10  }
  0x18   :  { %v218_v39 = vpop.eup %217 }
  0x19   :  { %v79_v45 = vmul.f32 %v218_v39, %v75_v38 }
  0x1b   :  { %214 = vset.pattern.permute.xlu1 %v231_v11  ;;  %v83_v53 = vmul.f32 %v79_v45, %v79_v45 }
  0x1c   :  { %181 = vperm.xlu1 %214, %v162_v10  }
  0x1e   :  { %117 = vperm.xlu0 %209, %v197_v7  }
  0x20   :  { %215 = vset.pattern.permute.xlu1 %v229_v2 }
  0x21   :  { %165 = vperm.xlu1 %215, %v162_v10  }
  0x22   :  { %216 = vset.pattern.permute.xlu0 %v231_v11 }
  0x7f   :  { %v56_v18 = vpop.permute.xlu1 %55 }
  0x80   :  { %v62_v21 = vmul.f32 %v61_v17, %v56_v18 }
  0x82   :  { %v63_v26 = vadd.f32 %v196_v22, %v62_v21 }
  0x84   :  { %v128_v23 = vpop.permute.xlu1 %127 }
  0x85   :  { %v134_v50 = vmul.f32 %v133_v43, %v128_v23 }
  0x88   :  { %v66_v27 = vpop.permute.xlu1 %65 }
  0x89   :  { %v72_v28 = vmul.f32 %v71_v24, %v66_v27 }
  0x8b   :  { %v73_v29 = vadd.f32 %v72_v28, %v63_v26 }
  0x8d   :  { %v80_v30 = vmul.f32 2.0, %v73_v29  ;;  %v91_v4 = vpop.permute.xlu1 %90 }
  0x8f   :  { %v81_v31 = vmul.f32 1.442695, %v80_v30 }
  0x91   :  { %219 = vpow2.f32 %v81_v31  ;;  %v34_v33 = vpop.xlane.xlu0 %33 }
  0x92   :  { %v35_v34 = vrot.slane %v34_v33, 4  ;;  %221 = vrcp.f32 %v140_v42  ;;  %v172_v26 = vpop.permute.xlu1 %171 }
  0x94   :  { %v36_v37 = vadd.f32 %v35_v34, %v34_v33 }
  0x96   :  { %v37_v40 = vrot.slane %v36_v37, 2 }
  0x97   :  { %v182_v29 = vpop.permute.xlu1 %181 }
  0x98   :  { %v38_v44 = vadd.f32 %v37_v40, %v36_v37 }
  0x99   :  { %v118_v47 = vpop.permute.xlu0 %117 }
  0x9a   :  { %v124_v48 = vmul.f32 %v123_v41, %v118_v47  ;;  %v39_v49 = vrot.slane %v38_v44, 1 }
  0x9c   :  { %v125_v51 = vadd.f32 %v200_v46, %v124_v48  ;;  %v40_v52 = vadd.f32 %v39_v49, %v38_v44  ;;  %v166_v31 = vpop.permute.xlu1 %165 }
  0x9e   :  { %v220_v54 = vpop.eup %219  ;;  %v135_v55 = vadd.f32 %v134_v50, %v125_v51  ;;  %202 = vpush %v40_v52 }
  0x9f   :  { %v84_v57 = vmul.f32 %v220_v54, %v83_v53  ;;  %v222_v61 = vpop.eup %221 }
  0xa0   :  { %v143_v56 = vmul.f32 2.0, %v135_v55  ;;  %v142_v62 = vmul.f32 %v222_v61, %v138_v60 }
  0xa1   :  { %v85_v59 = vadd.f32 1.0, %v84_v57 }
  0xa2   :  { %v144_v58 = vmul.f32 1.442695, %v143_v56  ;;  %v146_v63 = vmul.f32 %v142_v62, %v142_v62 }
  0xa4   :  { %223 = vpow2.f32 %v144_v58 }
  0xa5   :  { %225 = vrcp.f32 %v85_v59 }
  0xb1   :  { %v224_v0 = vpop.eup %223 }
  0xb2   :  { %v147_v1 = vmul.f32 %v224_v0, %v146_v63  ;;  %v226_v3 = vpop.eup %225 }
  0xb3   :  { %v93_v5 = vmul.f32 %v226_v3, %v91_v4 }
  0xb4   :  { %v148_v2 = vadd.f32 1.0, %v147_v1 }
  0xb5   :  { %v95_v6 = vsel %vm94_vm1, %v93_v5, 0.0 }
  0xb6   :  { %227 = vrcp.f32 %v148_v2  ;;  %v96_v7 = vrot.slane %v95_v6, 4 }
  0xb8   :  { %v97_v9 = vadd.f32 %v96_v7, %v95_v6 }
  0xba   :  { %v98_v12 = vrot.slane %v97_v9, 2 }
  0xbc   :  { %v99_v15 = vadd.f32 %v98_v12, %v97_v9 }
  0xbe   :  { %v100_v18 = vrot.slane %v99_v15, 1 }
  0xc0   :  { %v101_v22 = vadd.f32 %v100_v18, %v99_v15 }
  0xc3   :  { %v228_v8 = vpop.eup %227 }
  0xc4   :  { %v151_v10 = vmul.f32 %v228_v8, %v91_v4 }
  0xc6   :  { %v152_v11 = vsel %vm94_vm1, %v151_v10, 0.0 }
  0xc7   :  { %v153_v13 = vrot.slane %v152_v11, 4 }
  0xc9   :  { %v154_v14 = vadd.f32 %v153_v13, %v152_v11 }
  0xcb   :  { %v155_v16 = vrot.slane %v154_v14, 2 }
  0xcd   :  { %v156_v17 = vadd.f32 %v155_v16, %v154_v14 }
  0xcf   :  { %s203_s2 = spop %202  ;;  %v157_v19 = vrot.slane %v156_v17, 1 }
  0xd0   :  { %v42_v21 = vstv %s203_s2 }
  0xd1   :  { %v158_v20 = vadd.f32 %v157_v19, %v156_v17  ;;  %v43_v24 = vsub.f32 0.0, %v42_v21 }
  0xd3   :  { %v159_v23 = vmul.f32 2.0, %v158_v20 }
  0xd5   :  { %v160_v25 = vadd.f32 %v159_v23, %v101_v22 }
  0xd7   :  { %v161_v27 = vadd.f32 %v160_v25, %v43_v24 }
  0xd9   :  { %v174_v28 = vmul.f32 %v172_v26, %v161_v27  ;;  %v184_v30 = vmul.f32 %v182_v29, %v161_v27  ;;  %v168_v33 = vmul.f32 %v166_v31, %v161_v27 }
  0xdb   :  { %176 = vrot.lane.b32.xlu1 %v174_v28, %s232_s3 }
  0xdf   :  { %186 = vrot.lane.b32.xlu1 %v184_v30, %s233_s6 }
 0x14d   :  { %v177_v32 = vpop.permute.xlu1 %176 }
 0x14e   :  { %v179_v34 = vadd.f32 %v177_v32, %v168_v33 }
 0x151   :  { %v187_v35 = vpop.permute.xlu1 %186 }
 0x152   :  { %v189_v36 = vadd.f32 %v187_v35, %v179_v34 }
 0x154   :  { %191 = vst.msk [vmem:[%s317_s7] sm:$0xff] %vm190_vm2, %v189_v36 }

</bundles_post_ra>
